<compile_context>
chip_gen: v5e
topology: v5e:2x2
jax: 0.10.0
libtpu: 0.0.40
codegen_flags: <defaults>
</compile_context>

<pallas_src>
import functools

import jax
import jax.numpy as jnp
from jax.experimental import pallas as pl
from jax.experimental.pallas import tpu as pltpu


LANE = 128          # TPU lane width; working channel dims are zero-padded to this.
KPAD = 32           # stem im2col channels: 9*3=27 valid, padded to 32 lanes.

STEM_OUT = 16
HEAD_OUT = 64
# simplified MBConv-like blocks: (cin, cout, stride)
BLOCKS = [
    (16, 16, 1),
    (16, 24, 2),
    (24, 24, 1),
    (24, 40, 2),
]
OUTPUT_BLOCKS_IND = [1, 3]

NUM_WSTACK = 10     # 4 blocks, head, rfb0, rfb1 (split-K x2), last (split-K x2)
NUM_BIAS_ROWS = 16  # 9 used (stem + the 8 above), padded to a sublane-aligned 16


# ----------------------------------------------------------------------------
# Shared per-tile network body (used by the Pallas kernel AND the reference)
# ----------------------------------------------------------------------------
def _network_tile(x2d, stem_w, get_w, biases, th, w1):
    """EfficientNetRFB forward for one row-tile of one image.

    x2d    : (th*w1, KPAD) bf16   stride-4-decimated conv_stem im2col patches
    stem_w : (KPAD, 128)   bf16   BN-folded stem weight
    get_w  : i -> (128,128) bf16  BN-folded, zero-padded weight matrices
    biases : (16, 128) f32        BN-folded biases, one row per layer
    returns: ((th//2)*(w1//2), 128) f32 -- lanes >= 64 are zero padding
    """

    def dot(x, wi):
        return jnp.dot(x, get_w(wi), preferred_element_type=jnp.float32)

    def layer_from(acc, bi, act):       # folded-BN bias + bf16 activation
        yb = (acc + biases[bi:bi + 1, :]).astype(jnp.bfloat16)
        return yb * jax.nn.sigmoid(yb) if act == "swish" else jnp.maximum(yb, 0)

    def layer(x, wi, bi, act):          # 1x1 conv + folded BN + activation
        return layer_from(dot(x, wi), bi, act)

    def subsample(x, h, w):             # stride-2 (top-left) spatial decimation
        x = x.reshape(h // 2, 2, w, LANE)[:, 0:1].reshape(h // 2, w, LANE)
        x = x.reshape(h // 2, w // 2, 2, LANE)[:, :, 0:1]
        return x.reshape((h // 2) * (w // 2), LANE)

    def maxpool2x2(x, h, w):            # 2x2 / stride-2 max pool (pure VPU max)
        x = x.reshape(h // 2, 2, w, LANE)
        x = jnp.maximum(x[:, 0:1], x[:, 1:2]).reshape(h // 2, w, LANE)
        x = x.reshape(h // 2, w // 2, 2, LANE)
        x = jnp.maximum(x[:, :, 0:1], x[:, :, 1:2])
        return x.reshape((h // 2) * (w // 2), LANE)

    # ---- EfficientNet.extract_features (stride-2s hoisted above 1x1 convs) ----
    h = layer_from(jnp.dot(x2d, stem_w, preferred_element_type=jnp.float32),
                   0, "swish")                               # conv_stem + bn0 (decimated)
    h = layer(h, 0, 1, "swish")                              # block 0 (s=1, hoisted)
    ys0 = layer(h, 1, 2, "swish")                            # block 1 (s=2 pre-applied) -> ys[0]
    h2 = layer(subsample(ys0, th, w1), 2, 3, "swish")        # block 2 (s=1, hoisted past block3)
    ys1 = layer(h2, 3, 4, "swish")                           # block 3 (s=2) -> ys[1]
    head = layer(ys1, 4, 5, "swish")                         # conv_head + bn1

    # ---- RFB fusion path ----
    r = layer(ys0, 5, 6, "relu")                             # rfb[0]
    r = maxpool2x2(r, th, w1)                                # spatial mismatch -> 2x2 pool
    # rfb[1] on cat((ys[1], r)) as split-K: two dots, one accumulator, one bias
    r = layer_from(dot(ys1, 6) + dot(r, 7), 7, "relu")

    # ---- swish(last_bn(last_conv(cat(head, r)))) as split-K, f32 output ----
    y = dot(head, 8) + dot(r, 9) + biases[8:9, :]
    return y * jax.nn.sigmoid(y)


# ----------------------------------------------------------------------------
# Pallas kernel + wrapper
# ----------------------------------------------------------------------------
def _fused_kernel(x_ref, sw_ref, w_ref, b_ref, o_ref, *, th, w1):
    y = _network_tile(x_ref[0, 0], sw_ref[...], lambda i: w_ref[i], b_ref[...],
                      th, w1)
    o_ref[0, 0] = y.astype(o_ref.dtype)


def _stem_patches_dec(x_nhwc):
    """Stride-4-decimated im2col for the 3x3/stride-2/pad-1 conv_stem.

    Only the stem output positions that survive block1's stride-2 subsample are
    built (decimation hoisted above the pointwise stem/block0)."""
    B, H, W, C = x_nhwc.shape
    assert H % 8 == 0 and W % 8 == 0 and 9 * C <= KPAD
    xp = jnp.pad(x_nhwc, ((0, 0), (1, 1), (1, 1), (0, 0)))
    cols = [xp[:, dh:dh + H:4, dw:dw + W:4, :]
            for dh in range(3) for dw in range(3)]
    p = jnp.concatenate(cols, axis=-1)                        # (B, H//4, W//4, 27)
    p = jnp.pad(p, ((0, 0), (0, 0), (0, 0), (0, KPAD - 9 * C)))
    return p.astype(jnp.bfloat16)


def _pick_row_tile(h1, w1, max_rows=1024):
    """Largest even divisor of h1 keeping the tile (<= max_rows spatial rows)."""
    th = 2
    for cand in range(2, h1 + 1, 2):
        if h1 % cand == 0 and cand * w1 <= max_rows:
            th = cand
    return th


def efficientnet_rfb_forward(fused_params, x_nchw, row_tile=None):
    stem_w, w_stack, b_stack = fused_params
    x = jnp.transpose(x_nchw, (0, 2, 3, 1))          # NCHW -> NHWC
    B, H, W, _ = x.shape
    h1, w1 = H // 4, W // 4                          # working res after hoisted stride-4
    assert h1 % 2 == 0 and w1 % 2 == 0
    ho, wo = h1 // 2, w1 // 2                        # final spatial size (H/8, W/8)

    th = row_tile if row_tile is not None else _pick_row_tile(h1, w1)
    assert th % 2 == 0 and h1 % th == 0
    nt = h1 // th                                    # spatial row tiles

    patches = _stem_patches_dec(x).reshape(B, nt, th * w1, KPAD)   # bf16

    out = pl.pallas_call(
        functools.partial(_fused_kernel, th=th, w1=w1),
        out_shape=jax.ShapeDtypeStruct((B, nt, (th // 2) * wo, LANE), jnp.float32),
        grid_spec=pltpu.PrefetchScalarGridSpec(
            num_scalar_prefetch=0,
            grid=(B, nt),                            # batch x row-tile
            in_specs=[
                pl.BlockSpec((1, 1, th * w1, KPAD), lambda b, t: (b, t, 0, 0)),
                pl.BlockSpec((KPAD, LANE), lambda b, t: (0, 0)),
                pl.BlockSpec((NUM_WSTACK, LANE, LANE), lambda b, t: (0, 0, 0)),
                pl.BlockSpec((NUM_BIAS_ROWS, LANE), lambda b, t: (0, 0)),
            ],
            out_specs=pl.BlockSpec((1, 1, (th // 2) * wo, LANE),
                                   lambda b, t: (b, t, 0, 0)),
        ),
        compiler_params=pltpu.CompilerParams(
            dimension_semantics=("parallel", "parallel"),   # megacore on both axes
            vmem_limit_bytes=32 * 1024 * 1024,              # fits v7x's 64 MiB ceiling
        ),
    )(patches, stem_w, w_stack, b_stack)

    out = out.reshape(B, ho, wo, LANE)[:, :, :, :HEAD_OUT]
    return jnp.transpose(out, (0, 3, 1, 2))          # back to NCHW


# ----------------------------------------------------------------------------
# Synthetic parameters + prep (BN folding, lane padding, bf16 cast, stacking)
# ----------------------------------------------------------------------------
def _init_w(key, cin, cout):
    return jax.random.normal(key, (cin, cout), jnp.float32) / jnp.sqrt(float(cin))


def _init_bn(key, c):
    k1, k2 = jax.random.split(key)
    scale = 1.0 + 0.1 * jax.random.normal(k1, (c,), jnp.float32)
    bias = 0.1 * jax.random.normal(k2, (c,), jnp.float32)
    return scale, bias


def build_params(key):
    keys = jax.random.split(key, 32)
    ki = iter(keys)
    params = {}
    params["stem_w"] = _init_w(next(ki), 9 * 3, STEM_OUT)       # 3x3 conv, 3 -> 16
    params["stem_bn"] = _init_bn(next(ki), STEM_OUT)
    for i, (cin, cout, _) in enumerate(BLOCKS):
        params[f"block{i}_w"] = _init_w(next(ki), cin, cout)
        params[f"block{i}_bn"] = _init_bn(next(ki), cout)
    params["head_w"] = _init_w(next(ki), BLOCKS[-1][1], HEAD_OUT)
    params["head_bn"] = _init_bn(next(ki), HEAD_OUT)
    ch = [BLOCKS[i][1] for i in OUTPUT_BLOCKS_IND]              # [24, 40]
    params["rfb0_w"] = _init_w(next(ki), ch[0], ch[0])          # 24 -> 24
    params["rfb0_bn"] = _init_bn(next(ki), ch[0])
    params["rfb1_w"] = _init_w(next(ki), ch[0] + ch[1], ch[1])  # cat(ys1, r): 64 -> 40
    params["rfb1_bn"] = _init_bn(next(ki), ch[1])
    params["last_w"] = _init_w(next(ki), BLOCKS[-1][1] + HEAD_OUT, HEAD_OUT)  # 104 -> 64
    params["last_bn"] = _init_bn(next(ki), HEAD_OUT)
    return params


def _fold_pad(w, scale, rows=LANE):
    """Fold BN scale into weight columns, zero-pad to (rows,128), cast to bf16."""
    cin, cout = w.shape
    wf = jnp.zeros((rows, LANE), jnp.float32).at[:cin, :cout].set(w * scale[None, :])
    return wf.astype(jnp.bfloat16)


def _pad_bias(b):
    return jnp.zeros((LANE,), jnp.float32).at[:b.shape[0]].set(b)


def prepare_fused_params(params):
    """BN-folded / lane-padded bf16 weights (stem separate, 32-row) + f32 biases."""
    ws, bs = [], []

    # stem: its own (KPAD,128) weight; its bias occupies row 0
    s, b = params["stem_bn"]
    stem_w = _fold_pad(params["stem_w"], s, rows=KPAD)
    bs.append(_pad_bias(b))

    def add(w, bn):
        sc, bi = bn
        ws.append(_fold_pad(w, sc))
        bs.append(_pad_bias(bi))

    for i in range(len(BLOCKS)):
        add(params[f"block{i}_w"], params[f"block{i}_bn"])
    add(params["head_w"], params["head_bn"])
    add(params["rfb0_w"], params["rfb0_bn"])

    # rfb[1] consumed cat((ys[1], r)); split its weight by input rows (split-K).
    ch1 = BLOCKS[OUTPUT_BLOCKS_IND[1]][1]                       # 40
    s, b = params["rfb1_bn"]
    ws.append(_fold_pad(params["rfb1_w"][:ch1], s))             # rows for ys[1] (40 -> 40)
    ws.append(_fold_pad(params["rfb1_w"][ch1:], s))             # rows for r     (24 -> 40)
    bs.append(_pad_bias(b))

    # last_conv consumed cat((head, r)); split by input rows (split-K).
    s, b = params["last_bn"]
    ws.append(_fold_pad(params["last_w"][:HEAD_OUT], s))        # rows for head  (64 -> 64)
    ws.append(_fold_pad(params["last_w"][HEAD_OUT:], s))        # rows for r     (40 -> 64)
    bs.append(_pad_bias(b))

    w_stack = jnp.stack(ws)                                     # (10, 128, 128) bf16
    b_stack = jnp.zeros((NUM_BIAS_ROWS, LANE), jnp.float32).at[:len(bs)].set(jnp.stack(bs))
    assert w_stack.shape[0] == NUM_WSTACK
    return stem_w, w_stack, b_stack


# ----------------------------------------------------------------------------
# Pure-JAX reference (same math, whole image, no Pallas) for a correctness check
# ----------------------------------------------------------------------------
def efficientnet_rfb_reference(fused_params, x_nchw):
    stem_w, w_stack, b_stack = fused_params
    x = jnp.transpose(x_nchw, (0, 2, 3, 1))
    B, H, W, _ = x.shape
    h1, w1 = H // 4, W // 4
    ho, wo = h1 // 2, w1 // 2
    p = _stem_patches_dec(x).reshape(B, h1 * w1, KPAD)
    y = jnp.stack([_network_tile(p[b], stem_w, lambda i: w_stack[i], b_stack, h1, w1)
                   for b in range(B)])
    y = y.reshape(B, ho, wo, LANE)[:, :, :, :HEAD_OUT]
    return jnp.transpose(y, (0, 3, 1, 2))


# ----------------------------------------------------------------------------
if __name__ == "__main__":
    key = jax.random.PRNGKey(0)
    k_params, k_x = jax.random.split(key)
    params = build_params(k_params)
    fused = prepare_fused_params(params)
    x = jax.random.normal(k_x, (2, 3, 16, 16), jnp.float32)     # NCHW like PyTorch

    # row_tile=2 exercises the spatial grid axis (grid = (2 images, 2 row-tiles)).
    fwd = jax.jit(functools.partial(efficientnet_rfb_forward, row_tile=2))
    out = jax.block_until_ready(fwd(fused, x))
    assert out.shape == (2, HEAD_OUT, 2, 2), out.shape
    assert out.dtype == jnp.float32

    ref = jax.block_until_ready(efficientnet_rfb_reference(fused, x))
    err = float(jnp.max(jnp.abs(out - ref)))
    ref_mag = float(jnp.max(jnp.abs(ref)))
    assert err <= 5e-2 * max(1.0, ref_mag), \
        f"kernel vs reference mismatch: max|diff|={err}, max|ref|={ref_mag}"
    print("KERNEL_OK")
</pallas_src>

<mosaic_0001>
module attributes {stable_mosaic.version = 11 : i64} {
  func.func @_fused_kernel(%arg0: i32, %arg1: i32, %arg2: memref<1x1x8x32xbf16, #tpu.memory_space<vmem>>, %arg3: memref<32x128xbf16, #tpu.memory_space<vmem>>, %arg4: memref<10x128x128xbf16, #tpu.memory_space<vmem>>, %arg5: memref<16x128xf32, #tpu.memory_space<vmem>>, %arg6: memref<1x1x2x128xf32, #tpu.memory_space<vmem>>) attributes {dimension_semantics = [#tpu.dimension_semantics<parallel>, #tpu.dimension_semantics<parallel>], iteration_bounds = array<i64: 2, 2>, scalar_prefetch = 0 : i64, scratch_operands = 0 : i64, tpu.core_type = #tpu.core_type<tc>, window_params = [{transform_indices = @transform_0, window_bounds = array<i64: 1, 1, 8, 32>}, {pipeline_mode = #tpu.pipeline_mode<synchronous>, transform_indices = @transform_1, window_bounds = array<i64: 32, 128>}, {pipeline_mode = #tpu.pipeline_mode<synchronous>, transform_indices = @transform_2, window_bounds = array<i64: 10, 128, 128>}, {pipeline_mode = #tpu.pipeline_mode<synchronous>, transform_indices = @transform_3, window_bounds = array<i64: 16, 128>}, {transform_indices = @transform_4, window_bounds = array<i64: 1, 1, 2, 128>}]} {
    %c0 = arith.constant 0 : index
    %c0_0 = arith.constant 0 : index
    %c0_1 = arith.constant 0 : index
    %c0_2 = arith.constant 0 : index
    %0 = vector.load %arg2[%c0, %c0_0, %c0_1, %c0_2] : memref<1x1x8x32xbf16, #tpu.memory_space<vmem>>, vector<1x1x8x32xbf16>
    %1 = vector.shape_cast %0 : vector<1x1x8x32xbf16> to vector<8x32xbf16>
    %c0_3 = arith.constant 0 : index
    %c0_4 = arith.constant 0 : index
    %2 = vector.load %arg3[%c0_3, %c0_4] : memref<32x128xbf16, #tpu.memory_space<vmem>>, vector<32x128xbf16>
    %c0_5 = arith.constant 0 : index
    %c0_6 = arith.constant 0 : index
    %3 = vector.load %arg5[%c0_5, %c0_6] : memref<16x128xf32, #tpu.memory_space<vmem>>, vector<16x128xf32>
    %cst = arith.constant dense<0.000000e+00> : vector<8x128xf32>
    %4 = tpu.matmul %1, %2, %cst {dimension_numbers = #tpu.dot_dimension_numbers<[1], [0], [0], [1], [0, 0, 1, 1], [], []>} : vector<8x32xbf16>, vector<32x128xbf16>, vector<8x128xf32> -> vector<8x128xf32>
    %5 = vector.extract_strided_slice %3 {offsets = [0, 0], sizes = [1, 128], strides = [1, 1]} : vector<16x128xf32> to vector<1x128xf32>
    %6 = vector.broadcast %5 : vector<1x128xf32> to vector<8x128xf32>
    %7 = arith.addf %4, %6 : vector<8x128xf32>
    %8 = arith.truncf %7 : vector<8x128xf32> to vector<8x128xbf16>
    %9 = arith.negf %8 : vector<8x128xbf16>
    %10 = math.exp %9 : vector<8x128xbf16>
    %cst_7 = arith.constant 1.000000e+00 : bf16
    %11 = vector.broadcast %cst_7 : bf16 to vector<8x128xbf16>
    %12 = arith.addf %11, %10 : vector<8x128xbf16>
    %13 = arith.divf %11, %12 : vector<8x128xbf16>
    %14 = arith.mulf %8, %13 : vector<8x128xbf16>
    %c0_8 = arith.constant 0 : index
    %c0_9 = arith.constant 0 : index
    %c0_10 = arith.constant 0 : index
    %15 = vector.load %arg4[%c0_8, %c0_9, %c0_10] : memref<10x128x128xbf16, #tpu.memory_space<vmem>>, vector<1x128x128xbf16>
    %16 = vector.shape_cast %15 : vector<1x128x128xbf16> to vector<128x128xbf16>
    %cst_11 = arith.constant dense<0.000000e+00> : vector<8x128xf32>
    %17 = tpu.matmul %14, %16, %cst_11 {dimension_numbers = #tpu.dot_dimension_numbers<[1], [0], [0], [1], [0, 0, 1, 1], [], []>} : vector<8x128xbf16>, vector<128x128xbf16>, vector<8x128xf32> -> vector<8x128xf32>
    %18 = vector.extract_strided_slice %3 {offsets = [1, 0], sizes = [1, 128], strides = [1, 1]} : vector<16x128xf32> to vector<1x128xf32>
    %19 = vector.broadcast %18 : vector<1x128xf32> to vector<8x128xf32>
    %20 = arith.addf %17, %19 : vector<8x128xf32>
    %21 = arith.truncf %20 : vector<8x128xf32> to vector<8x128xbf16>
    %22 = arith.negf %21 : vector<8x128xbf16>
    %23 = math.exp %22 : vector<8x128xbf16>
    %cst_12 = arith.constant 1.000000e+00 : bf16
    %24 = vector.broadcast %cst_12 : bf16 to vector<8x128xbf16>
    %25 = arith.addf %24, %23 : vector<8x128xbf16>
    %26 = arith.divf %24, %25 : vector<8x128xbf16>
    %27 = arith.mulf %21, %26 : vector<8x128xbf16>
    %c1 = arith.constant 1 : index
    %c0_13 = arith.constant 0 : index
    %c0_14 = arith.constant 0 : index
    %28 = vector.load %arg4[%c1, %c0_13, %c0_14] : memref<10x128x128xbf16, #tpu.memory_space<vmem>>, vector<1x128x128xbf16>
    %29 = vector.shape_cast %28 : vector<1x128x128xbf16> to vector<128x128xbf16>
    %cst_15 = arith.constant dense<0.000000e+00> : vector<8x128xf32>
    %30 = tpu.matmul %27, %29, %cst_15 {dimension_numbers = #tpu.dot_dimension_numbers<[1], [0], [0], [1], [0, 0, 1, 1], [], []>} : vector<8x128xbf16>, vector<128x128xbf16>, vector<8x128xf32> -> vector<8x128xf32>
    %31 = vector.extract_strided_slice %3 {offsets = [2, 0], sizes = [1, 128], strides = [1, 1]} : vector<16x128xf32> to vector<1x128xf32>
    %32 = vector.broadcast %31 : vector<1x128xf32> to vector<8x128xf32>
    %33 = arith.addf %30, %32 : vector<8x128xf32>
    %34 = arith.truncf %33 : vector<8x128xf32> to vector<8x128xbf16>
    %35 = arith.negf %34 : vector<8x128xbf16>
    %36 = math.exp %35 : vector<8x128xbf16>
    %cst_16 = arith.constant 1.000000e+00 : bf16
    %37 = vector.broadcast %cst_16 : bf16 to vector<8x128xbf16>
    %38 = arith.addf %37, %36 : vector<8x128xbf16>
    %39 = arith.divf %37, %38 : vector<8x128xbf16>
    %40 = arith.mulf %34, %39 : vector<8x128xbf16>
    %41 = vector.shape_cast %40 : vector<8x128xbf16> to vector<1x2x4x128xbf16>
    %42 = vector.extract_strided_slice %41 {offsets = [0, 0, 0, 0], sizes = [1, 1, 4, 128], strides = [1, 1, 1, 1]} : vector<1x2x4x128xbf16> to vector<1x1x4x128xbf16>
    %43 = vector.shape_cast %42 : vector<1x1x4x128xbf16> to vector<1x4x128xbf16>
    %44 = vector.shape_cast %43 : vector<1x4x128xbf16> to vector<1x2x2x128xbf16>
    %45 = vector.extract_strided_slice %44 {offsets = [0, 0, 0, 0], sizes = [1, 2, 1, 128], strides = [1, 1, 1, 1]} : vector<1x2x2x128xbf16> to vector<1x2x1x128xbf16>
    %46 = vector.shape_cast %45 : vector<1x2x1x128xbf16> to vector<2x128xbf16>
    %c2 = arith.constant 2 : index
    %c0_17 = arith.constant 0 : index
    %c0_18 = arith.constant 0 : index
    %47 = vector.load %arg4[%c2, %c0_17, %c0_18] : memref<10x128x128xbf16, #tpu.memory_space<vmem>>, vector<1x128x128xbf16>
    %48 = vector.shape_cast %47 : vector<1x128x128xbf16> to vector<128x128xbf16>
    %cst_19 = arith.constant dense<0.000000e+00> : vector<2x128xf32>
    %49 = tpu.matmul %46, %48, %cst_19 {dimension_numbers = #tpu.dot_dimension_numbers<[1], [0], [0], [1], [0, 0, 1, 1], [], []>} : vector<2x128xbf16>, vector<128x128xbf16>, vector<2x128xf32> -> vector<2x128xf32>
    %50 = vector.extract_strided_slice %3 {offsets = [3, 0], sizes = [1, 128], strides = [1, 1]} : vector<16x128xf32> to vector<1x128xf32>
    %51 = vector.broadcast %50 : vector<1x128xf32> to vector<2x128xf32>
    %52 = arith.addf %49, %51 : vector<2x128xf32>
    %53 = arith.truncf %52 : vector<2x128xf32> to vector<2x128xbf16>
    %54 = arith.negf %53 : vector<2x128xbf16>
    %55 = math.exp %54 : vector<2x128xbf16>
    %cst_20 = arith.constant 1.000000e+00 : bf16
    %56 = vector.broadcast %cst_20 : bf16 to vector<2x128xbf16>
    %57 = arith.addf %56, %55 : vector<2x128xbf16>
    %58 = arith.divf %56, %57 : vector<2x128xbf16>
    %59 = arith.mulf %53, %58 : vector<2x128xbf16>
    %c3 = arith.constant 3 : index
    %c0_21 = arith.constant 0 : index
    %c0_22 = arith.constant 0 : index
    %60 = vector.load %arg4[%c3, %c0_21, %c0_22] : memref<10x128x128xbf16, #tpu.memory_space<vmem>>, vector<1x128x128xbf16>
    %61 = vector.shape_cast %60 : vector<1x128x128xbf16> to vector<128x128xbf16>
    %cst_23 = arith.constant dense<0.000000e+00> : vector<2x128xf32>
    %62 = tpu.matmul %59, %61, %cst_23 {dimension_numbers = #tpu.dot_dimension_numbers<[1], [0], [0], [1], [0, 0, 1, 1], [], []>} : vector<2x128xbf16>, vector<128x128xbf16>, vector<2x128xf32> -> vector<2x128xf32>
    %63 = vector.extract_strided_slice %3 {offsets = [4, 0], sizes = [1, 128], strides = [1, 1]} : vector<16x128xf32> to vector<1x128xf32>
    %64 = vector.broadcast %63 : vector<1x128xf32> to vector<2x128xf32>
    %65 = arith.addf %62, %64 : vector<2x128xf32>
    %66 = arith.truncf %65 : vector<2x128xf32> to vector<2x128xbf16>
    %67 = arith.negf %66 : vector<2x128xbf16>
    %68 = math.exp %67 : vector<2x128xbf16>
    %cst_24 = arith.constant 1.000000e+00 : bf16
    %69 = vector.broadcast %cst_24 : bf16 to vector<2x128xbf16>
    %70 = arith.addf %69, %68 : vector<2x128xbf16>
    %71 = arith.divf %69, %70 : vector<2x128xbf16>
    %72 = arith.mulf %66, %71 : vector<2x128xbf16>
    %c4 = arith.constant 4 : index
    %c0_25 = arith.constant 0 : index
    %c0_26 = arith.constant 0 : index
    %73 = vector.load %arg4[%c4, %c0_25, %c0_26] : memref<10x128x128xbf16, #tpu.memory_space<vmem>>, vector<1x128x128xbf16>
    %74 = vector.shape_cast %73 : vector<1x128x128xbf16> to vector<128x128xbf16>
    %cst_27 = arith.constant dense<0.000000e+00> : vector<2x128xf32>
    %75 = tpu.matmul %72, %74, %cst_27 {dimension_numbers = #tpu.dot_dimension_numbers<[1], [0], [0], [1], [0, 0, 1, 1], [], []>} : vector<2x128xbf16>, vector<128x128xbf16>, vector<2x128xf32> -> vector<2x128xf32>
    %76 = vector.extract_strided_slice %3 {offsets = [5, 0], sizes = [1, 128], strides = [1, 1]} : vector<16x128xf32> to vector<1x128xf32>
    %77 = vector.broadcast %76 : vector<1x128xf32> to vector<2x128xf32>
    %78 = arith.addf %75, %77 : vector<2x128xf32>
    %79 = arith.truncf %78 : vector<2x128xf32> to vector<2x128xbf16>
    %80 = arith.negf %79 : vector<2x128xbf16>
    %81 = math.exp %80 : vector<2x128xbf16>
    %cst_28 = arith.constant 1.000000e+00 : bf16
    %82 = vector.broadcast %cst_28 : bf16 to vector<2x128xbf16>
    %83 = arith.addf %82, %81 : vector<2x128xbf16>
    %84 = arith.divf %82, %83 : vector<2x128xbf16>
    %85 = arith.mulf %79, %84 : vector<2x128xbf16>
    %c5 = arith.constant 5 : index
    %c0_29 = arith.constant 0 : index
    %c0_30 = arith.constant 0 : index
    %86 = vector.load %arg4[%c5, %c0_29, %c0_30] : memref<10x128x128xbf16, #tpu.memory_space<vmem>>, vector<1x128x128xbf16>
    %87 = vector.shape_cast %86 : vector<1x128x128xbf16> to vector<128x128xbf16>
    %cst_31 = arith.constant dense<0.000000e+00> : vector<8x128xf32>
    %88 = tpu.matmul %40, %87, %cst_31 {dimension_numbers = #tpu.dot_dimension_numbers<[1], [0], [0], [1], [0, 0, 1, 1], [], []>} : vector<8x128xbf16>, vector<128x128xbf16>, vector<8x128xf32> -> vector<8x128xf32>
    %89 = vector.extract_strided_slice %3 {offsets = [6, 0], sizes = [1, 128], strides = [1, 1]} : vector<16x128xf32> to vector<1x128xf32>
    %90 = vector.broadcast %89 : vector<1x128xf32> to vector<8x128xf32>
    %91 = arith.addf %88, %90 : vector<8x128xf32>
    %92 = arith.truncf %91 : vector<8x128xf32> to vector<8x128xbf16>
    %cst_32 = arith.constant 0.000000e+00 : bf16
    %93 = vector.broadcast %cst_32 : bf16 to vector<8x128xbf16>
    %94 = arith.maximumf %92, %93 : vector<8x128xbf16>
    %95 = vector.shape_cast %94 : vector<8x128xbf16> to vector<1x2x4x128xbf16>
    %96 = vector.extract_strided_slice %95 {offsets = [0, 0, 0, 0], sizes = [1, 1, 4, 128], strides = [1, 1, 1, 1]} : vector<1x2x4x128xbf16> to vector<1x1x4x128xbf16>
    %97 = vector.extract_strided_slice %95 {offsets = [0, 1, 0, 0], sizes = [1, 1, 4, 128], strides = [1, 1, 1, 1]} : vector<1x2x4x128xbf16> to vector<1x1x4x128xbf16>
    %98 = arith.maximumf %96, %97 : vector<1x1x4x128xbf16>
    %99 = vector.shape_cast %98 : vector<1x1x4x128xbf16> to vector<1x4x128xbf16>
    %100 = vector.shape_cast %99 : vector<1x4x128xbf16> to vector<1x2x2x128xbf16>
    %101 = vector.extract_strided_slice %100 {offsets = [0, 0, 0, 0], sizes = [1, 2, 1, 128], strides = [1, 1, 1, 1]} : vector<1x2x2x128xbf16> to vector<1x2x1x128xbf16>
    %102 = vector.extract_strided_slice %100 {offsets = [0, 0, 1, 0], sizes = [1, 2, 1, 128], strides = [1, 1, 1, 1]} : vector<1x2x2x128xbf16> to vector<1x2x1x128xbf16>
    %103 = arith.maximumf %101, %102 : vector<1x2x1x128xbf16>
    %104 = vector.shape_cast %103 : vector<1x2x1x128xbf16> to vector<2x128xbf16>
    %c6 = arith.constant 6 : index
    %c0_33 = arith.constant 0 : index
    %c0_34 = arith.constant 0 : index
    %105 = vector.load %arg4[%c6, %c0_33, %c0_34] : memref<10x128x128xbf16, #tpu.memory_space<vmem>>, vector<1x128x128xbf16>
    %106 = vector.shape_cast %105 : vector<1x128x128xbf16> to vector<128x128xbf16>
    %cst_35 = arith.constant dense<0.000000e+00> : vector<2x128xf32>
    %107 = tpu.matmul %72, %106, %cst_35 {dimension_numbers = #tpu.dot_dimension_numbers<[1], [0], [0], [1], [0, 0, 1, 1], [], []>} : vector<2x128xbf16>, vector<128x128xbf16>, vector<2x128xf32> -> vector<2x128xf32>
    %c7 = arith.constant 7 : index
    %c0_36 = arith.constant 0 : index
    %c0_37 = arith.constant 0 : index
    %108 = vector.load %arg4[%c7, %c0_36, %c0_37] : memref<10x128x128xbf16, #tpu.memory_space<vmem>>, vector<1x128x128xbf16>
    %109 = vector.shape_cast %108 : vector<1x128x128xbf16> to vector<128x128xbf16>
    %cst_38 = arith.constant dense<0.000000e+00> : vector<2x128xf32>
    %110 = tpu.matmul %104, %109, %cst_38 {dimension_numbers = #tpu.dot_dimension_numbers<[1], [0], [0], [1], [0, 0, 1, 1], [], []>} : vector<2x128xbf16>, vector<128x128xbf16>, vector<2x128xf32> -> vector<2x128xf32>
    %111 = arith.addf %107, %110 : vector<2x128xf32>
    %112 = vector.extract_strided_slice %3 {offsets = [7, 0], sizes = [1, 128], strides = [1, 1]} : vector<16x128xf32> to vector<1x128xf32>
    %113 = vector.broadcast %112 : vector<1x128xf32> to vector<2x128xf32>
    %114 = arith.addf %111, %113 : vector<2x128xf32>
    %115 = arith.truncf %114 : vector<2x128xf32> to vector<2x128xbf16>
    %cst_39 = arith.constant 0.000000e+00 : bf16
    %116 = vector.broadcast %cst_39 : bf16 to vector<2x128xbf16>
    %117 = arith.maximumf %115, %116 : vector<2x128xbf16>
    %c8 = arith.constant 8 : index
    %c0_40 = arith.constant 0 : index
    %c0_41 = arith.constant 0 : index
    %118 = vector.load %arg4[%c8, %c0_40, %c0_41] : memref<10x128x128xbf16, #tpu.memory_space<vmem>>, vector<1x128x128xbf16>
    %119 = vector.shape_cast %118 : vector<1x128x128xbf16> to vector<128x128xbf16>
    %cst_42 = arith.constant dense<0.000000e+00> : vector<2x128xf32>
    %120 = tpu.matmul %85, %119, %cst_42 {dimension_numbers = #tpu.dot_dimension_numbers<[1], [0], [0], [1], [0, 0, 1, 1], [], []>} : vector<2x128xbf16>, vector<128x128xbf16>, vector<2x128xf32> -> vector<2x128xf32>
    %c9 = arith.constant 9 : index
    %c0_43 = arith.constant 0 : index
    %c0_44 = arith.constant 0 : index
    %121 = vector.load %arg4[%c9, %c0_43, %c0_44] : memref<10x128x128xbf16, #tpu.memory_space<vmem>>, vector<1x128x128xbf16>
    %122 = vector.shape_cast %121 : vector<1x128x128xbf16> to vector<128x128xbf16>
    %cst_45 = arith.constant dense<0.000000e+00> : vector<2x128xf32>
    %123 = tpu.matmul %117, %122, %cst_45 {dimension_numbers = #tpu.dot_dimension_numbers<[1], [0], [0], [1], [0, 0, 1, 1], [], []>} : vector<2x128xbf16>, vector<128x128xbf16>, vector<2x128xf32> -> vector<2x128xf32>
    %124 = arith.addf %120, %123 : vector<2x128xf32>
    %125 = vector.extract_strided_slice %3 {offsets = [8, 0], sizes = [1, 128], strides = [1, 1]} : vector<16x128xf32> to vector<1x128xf32>
    %126 = vector.broadcast %125 : vector<1x128xf32> to vector<2x128xf32>
    %127 = arith.addf %124, %126 : vector<2x128xf32>
    %128 = arith.negf %127 : vector<2x128xf32>
    %129 = math.exp %128 : vector<2x128xf32>
    %cst_46 = arith.constant 1.000000e+00 : f32
    %130 = vector.broadcast %cst_46 : f32 to vector<2x128xf32>
    %131 = arith.addf %130, %129 : vector<2x128xf32>
    %132 = arith.divf %130, %131 : vector<2x128xf32>
    %133 = arith.mulf %127, %132 : vector<2x128xf32>
    %c0_47 = arith.constant 0 : index
    %c0_48 = arith.constant 0 : index
    %c0_49 = arith.constant 0 : index
    %c0_50 = arith.constant 0 : index
    %134 = vector.load %arg6[%c0_47, %c0_48, %c0_49, %c0_50] : memref<1x1x2x128xf32, #tpu.memory_space<vmem>>, vector<1x1x2x128xf32>
    %135 = vector.shape_cast %134 : vector<1x1x2x128xf32> to vector<2x128xf32>
    %136 = vector.shape_cast %133 : vector<2x128xf32> to vector<1x1x2x128xf32>
    tpu.vector_store %arg6[%c0_47, %c0_48, %c0_49, %c0_50], %136 {strides = array<i32>} : memref<1x1x2x128xf32, #tpu.memory_space<vmem>>, vector<1x1x2x128xf32>,
    return
  }
  func.func @transform_0(%arg0: i32, %arg1: i32) -> (i32, i32, i32, i32) {
    %c0_i32 = arith.constant 0 : i32
    %c0_i32_0 = arith.constant 0 : i32
    %c0_i32_1 = arith.constant 0 : i32
    return %arg0, %arg1, %c0_i32, %c0_i32_0 : i32, i32, i32, i32
  }
  func.func @transform_1(%arg0: i32, %arg1: i32) -> (i32, i32) {
    %c0_i32 = arith.constant 0 : i32
    %c0_i32_0 = arith.constant 0 : i32
    %c0_i32_1 = arith.constant 0 : i32
    return %c0_i32, %c0_i32_0 : i32, i32
  }
  func.func @transform_2(%arg0: i32, %arg1: i32) -> (i32, i32, i32) {
    %c0_i32 = arith.constant 0 : i32
    %c0_i32_0 = arith.constant 0 : i32
    %c0_i32_1 = arith.constant 0 : i32
    %c0_i32_2 = arith.constant 0 : i32
    return %c0_i32, %c0_i32_0, %c0_i32_1 : i32, i32, i32
  }
  func.func @transform_3(%arg0: i32, %arg1: i32) -> (i32, i32) {
    %c0_i32 = arith.constant 0 : i32
    %c0_i32_0 = arith.constant 0 : i32
    %c0_i32_1 = arith.constant 0 : i32
    return %c0_i32, %c0_i32_0 : i32, i32
  }
  func.func @transform_4(%arg0: i32, %arg1: i32) -> (i32, i32, i32, i32) {
    %c0_i32 = arith.constant 0 : i32
    %c0_i32_0 = arith.constant 0 : i32
    %c0_i32_1 = arith.constant 0 : i32
    return %arg0, %arg1, %c0_i32, %c0_i32_0 : i32, i32, i32, i32
  }
}

</mosaic_0001>

<bundles_post_ra>
// kernel: efficientnet_rfb_forward.1
= control target key start
LH: loop header
LB: loop body
LE: loop exit
PB: predicated region body
PF: predicated region fallthrough
CT: control target
= control target key end

     0   :  { %s2102_s15 = smov 0   ;;  %s2104_s16 = smov 0   ;;  %s2447_s0 = inlined_call_operand.vmem [shape: bf16[2,2,8,32], index: 0, kind: input, shape index: {}]   ;;  %s2448_s1 = inlined_call_operand.vmem [shape: bf16[32,128], index: 1, kind: input, shape index: {}]   ;;  %s2449_s2 = inlined_call_operand.vmem [shape: bf16[10,128,128], index: 2, kind: input, shape index: {}]   ;;  %s2450_s3 = inlined_call_operand.vmem [shape: f32[16,128], index: 3, kind: input, shape index: {}]   ;;  %s2451_s4 = inlined_call_operand.vmem [shape: f32[2,2,2,128], index: 4, kind: output, shape index: {}]  }
   0x1   :  { %s2106_s17 = smov 0   ;;  %s2108_s18 = smov 0  }
   0x2   :  { %s2110_s19 = smov 0  }
   0x3 LB: > { %s23_s20 = sadd.s32 1, %s2066_s17  ;;  %s26_s21 = sadd.s32 1, %s2070_s18  ;;  %s2074_s19 = sphi %s2110_s19, %s14_s19   ;;  %s2070_s18 = sphi %s2108_s18, %s2455_s18   ;;  %s2066_s17 = sphi %s2106_s17, %s2454_s17   ;;  %s2062_s16 = sphi %s2104_s16, %s2453_s16   ;;  %s2058_s15 = sphi %s2102_s15, %s2452_s15  }
   0x4   : > { %p24_p0 = scmp.ge.s32.totalorder %s23_s20, 2  ;;  %p1388_p1 = scmp.ge.s32.totalorder %s2074_s19, 1 }
   0x5   : > { %p181_p2 = scmp.lt.s32.totalorder %s2074_s19, 5 }
   0x6   : > { %s2457_s20 = smov (%p24_p0, %s23_s20), 0  ;;  %s2459_s21 = smov (!%p24_p0, %s26_s21), %s2070_s18 }
   0x7   : > { %p182_p3 = pnand %p1388_p1, %p181_p2  ;;  %p28_p4 = scmp.ge.s32.totalorder %s2459_s21, 2 }
   0x8   : > { %p213_p5 = scmp.lt.s32.totalorder (!%p182_p3), %s2062_s16, 1  ;;  %p215_p6 = scmp.lt.s32.totalorder (!%p182_p3), %s2058_s15, 1 }
   0x9   : > { %s2461_s21 = smov (%p28_p4, %s2459_s21), 0  ;;  %185 = sbr.rel (%p182_p3) target bundleno = 1257 (0x4e9), region = 36 }
   0xe   : > { %v1874_v0 = vld [vmem:[%s2448_s1 + $0x8] sm:$0xff]  ;;  %v1873_v1 = vld [vmem:[%s2448_s1] sm:$0xff]  ;;  %s2463_s16 = smov (!%p213_p5, %s2062_s16), 1  ;;  %s2465_s15 = smov (!%p215_p6, %s2058_s15), 1  ;;  %vm251_vm0 = vcmask 261120   ;;  %v1882_v3 = vld [vmem:[%s2449_s2 + $0x38] sm:$0xff] }
   0xf   : > { %261 = vmatpush.bf16.msra.mxu0 %v1874_v0  ;;  %s1389_s26 = sshll.u32 %s2463_s16, 1  ;;  %355 = vmatpush.bf16.msra.mxu1 %v1882_v3  ;;  %v1881_v4 = vld [vmem:[%s2449_s2 + $0x30] sm:$0xff]  ;;  %v1880_v5 = vld [vmem:[%s2449_s2 + $0x28] sm:$0xff]  ;;  %v1879_v6 = vld [vmem:[%s2449_s2 + $0x20] sm:$0xff]  ;;  %v2076_v27 = vmov 1065369472  }
  0x10   : > { %s2138_s27 = sadd.s32 %s1389_s26, %s2465_s15  ;;  %v2159_v7 = vld [vmem:[%s2450_s3] sm:$0xff]  ;;  %v1878_v9 = vld [vmem:[%s2449_s2 + $0x18] sm:$0xff]  ;;  %v1877_v10 = vld [vmem:[%s2449_s2 + $0x10] sm:$0xff]  ;;  %v2174_v28 = vunpack.c.h.bf16 %v2076_v27  ;;  %v2176_v29 = vunpack.c.l.bf16 %v2076_v27  ;;  %vm489_vm1 = vcmask 1041408   ;;  %vm497_vm2 = vcmask 1040384  }
  0x11   : > { %s1390_s28 = sshll.u32 %s2138_s27, 2  ;;  %v238_v8 = vperm.slane %v2159_v7, 0  ;;  %v1876_v14 = vld [vmem:[%s2449_s2 + $0x8] sm:$0xff]  ;;  %v1875_v17 = vld [vmem:[%s2449_s2] sm:$0xff]  ;;  %v1890_v39 = vld [vmem:[%s2449_s2 + $0x78] sm:$0xff]  ;;  %v306_v43 = vperm.slane %v2159_v7, 1 }
  0x12   : > { %s220_s5 = scalar_lea.vmem %s2447_s0, %s1390_s28  ;;  %454 = vmatpush.bf16.msra.mxu2 %v1890_v39  ;;  %v1889_v40 = vld [vmem:[%s2449_s2 + $0x70] sm:$0xff]  ;;  %v1888_v41 = vld [vmem:[%s2449_s2 + $0x68] sm:$0xff]  ;;  %v1887_v42 = vld [vmem:[%s2449_s2 + $0x60] sm:$0xff]  ;;  %vm500_vm3 = vcmask 1042434   ;;  %vm505_vm4 = vcmask 1041409   ;;  %vm507_vm5 = vcmask 1043459  }
  0x13   : > { %262 = vmatpush.bf16.msra.mxu0 %v1873_v1  ;;  %v231_v2 = vld [vmem:[%s220_s5] sm:$0xf]  ;;  %356 = vmatpush.bf16.msra.mxu1 %v1881_v4  ;;  %v1886_v44 = vld [vmem:[%s2449_s2 + $0x58] sm:$0xff]  ;;  %v1885_v45 = vld [vmem:[%s2449_s2 + $0x50] sm:$0xff]  ;;  %vm509_vm6 = vcmask 1042433   ;;  %vm911_vm7 = vcmask 1043458  }
  0x14   : > { %v1884_v49 = vld [vmem:[%s2449_s2 + $0x48] sm:$0xff]  ;;  %v1883_v52 = vld [vmem:[%s2449_s2 + $0x40] sm:$0xff]  ;;  %s1392_s10 = sshll.u32 %s2138_s27, 1 }
  0x15   : > { %v1896_v27 = vld [vmem:[%s2449_s2 + $0xa8] sm:$0xff]  ;;  %s228_s13 = scalar_lea.vmem %s2451_s4, %s1392_s10 }
  0x16   : > { %1401 = vmatmul.msk.bf16.vlgmr.msra.gmra.mxu0 %vm251_vm0, %v231_v2  ;;  %455 = vmatpush.bf16.msra.mxu2 %v1889_v40  ;;  %v1892_v39 = vld [vmem:[%s2449_s2 + $0x88] sm:$0xff] }
  0x17   : > { %357 = vmatpush.bf16.msra.mxu1 %v1880_v5 }
  0x1a   : > { %456 = vmatpush.bf16.msra.mxu2 %v1888_v41 }
  0x1b   : > { %358 = vmatpush.bf16.msra.mxu1 %v1879_v6 }
  0x1e   : > { %457 = vmatpush.bf16.msra.mxu2 %v1887_v42 }
  0x1f   : > { %359 = vmatpush.bf16.msra.mxu1 %v1878_v9  ;;  %v1921_v9 = vld [vmem:[%s2449_s2 + $0x170] sm:$0xff] }
  0x22   : > { %458 = vmatpush.bf16.msra.mxu2 %v1886_v44  ;;  %v1891_v44 = vld [vmem:[%s2449_s2 + $0x80] sm:$0xff] }
  0x23   : > { %360 = vmatpush.bf16.msra.mxu1 %v1877_v10  ;;  %v1920_v10 = vld [vmem:[%s2449_s2 + $0x168] sm:$0xff] }
  0x26   : > { %459 = vmatpush.bf16.msra.mxu2 %v1885_v45 }
  0x27   : > { %361 = vmatpush.bf16.msra.mxu1 %v1876_v14  ;;  %v1898_v14 = vld [vmem:[%s2449_s2 + $0xb8] sm:$0xff] }
  0x28   : > { %592 = vmatpush.bf16.msra.mxu3 %v1898_v14  ;;  %v1932_v14 = vld [vmem:[%s2449_s2 + $0x1c8] sm:$0xff] }
  0x2a   : > { %460 = vmatpush.bf16.msra.mxu2 %v1884_v49 }
  0x2b   : > { %362 = vmatpush.bf16.msra.mxu1 %v1875_v17 }
  0x2e   : > { %461 = vmatpush.bf16.msra.mxu2 %v1883_v52 }
  0x93   : > { %v264_v11 = vpop.f32.mrf.mxu0 }
  0x94   : > { %v265_v12 = vadd.f32 %v264_v11, %v238_v8  ;;  %v1922_v8 = vld [vmem:[%s2449_s2 + $0x178] sm:$0xff]  ;;  %v1919_v11 = vld [vmem:[%s2449_s2 + $0x160] sm:$0xff] }
  0x95   : > { %889 = vmatpush.bf16.msrb.mxu2 %v1922_v8  ;;  %v1936_v8 = vld [vmem:[%s2449_s2 + $0x1e8] sm:$0xff] }
  0x96   : > { %v268_v13 = vpack.c.bf16 %v265_v12, %v265_v12  ;;  %v405_v12 = vperm.slane %v2159_v7, 2 }
  0x98   : > { %v269_v15 = vxor.u32 2147516416, %v268_v13  ;;  %v286_v35 = vunpack.c.l.bf16 %v268_v13  ;;  %v1918_v13 = vld [vmem:[%s2449_s2 + $0x158] sm:$0xff] }
  0x99   : > { %890 = vmatpush.bf16.msrb.mxu2 %v1921_v9  ;;  %v1935_v9 = vld [vmem:[%s2449_s2 + $0x1e0] sm:$0xff] }
  0x9a   : > { %v270_v16 = vunpack.c.l.bf16 %v269_v15  ;;  %v1917_v15 = vld [vmem:[%s2449_s2 + $0x150] sm:$0xff] }
  0x9b   : > { %v266_v18 = vpop.f32.mrf.mxu0 }
  0x9c   : > { %v271_v19 = vmul.f32 1.442695, %v270_v16 }
  0x9d   : > { %891 = vmatpush.bf16.msrb.mxu2 %v1920_v10  ;;  %v1934_v10 = vld [vmem:[%s2449_s2 + $0x1d8] sm:$0xff] }
  0x9e   : > { %1996 = vpow2.f32 %v271_v19  ;;  %v1916_v19 = vld [vmem:[%s2449_s2 + $0x148] sm:$0xff] }
  0xa1   : > { %892 = vmatpush.bf16.msrb.mxu2 %v1919_v11  ;;  %v1933_v11 = vld [vmem:[%s2449_s2 + $0x1d0] sm:$0xff] }
  0xa4   : > { %v1997_v20 = vpop.eup %1996 }
  0xa5   : > { %v273_v21 = vpack.c.bf16 %v1997_v20, %v1997_v20  ;;  %893 = vmatpush.bf16.msrb.mxu2 %v1918_v13 }
  0xa7   : > { %v274_v22 = vunpack.c.l.bf16 %v273_v21 }
  0xa9   : > { %v275_v23 = vadd.f32 1.0, %v274_v22  ;;  %894 = vmatpush.bf16.msrb.mxu2 %v1917_v15  ;;  %v1915_v22 = vld [vmem:[%s2449_s2 + $0x140] sm:$0xff] }
  0xab   : > { %v276_v24 = vpack.c.bf16 %v275_v23, %v275_v23 }
  0xad   : > { %v279_v25 = vunpack.c.h.bf16 %v276_v24  ;;  %v280_v26 = vunpack.c.l.bf16 %v276_v24  ;;  %895 = vmatpush.bf16.msrb.mxu2 %v1916_v19 }
  0xaf   : > { %1998 = vrcp.f32 %v279_v25  ;;  %v1897_v25 = vld [vmem:[%s2449_s2 + $0xb0] sm:$0xff] }
  0xb0   : > { %2000 = vrcp.f32 %v280_v26  ;;  %593 = vmatpush.bf16.msra.mxu3 %v1897_v25 }
  0xb1   : > { %896 = vmatpush.bf16.msrb.mxu2 %v1915_v22 }
  0xb4   : > { %594 = vmatpush.bf16.msra.mxu3 %v1896_v27 }
  0xb5   : > { %v1999_v30 = vpop.eup %1998 }
  0xb6   : > { %v2001_v31 = vpop.eup %2000  ;;  %v282_v32 = vmul.f32 %v1999_v30, %v2174_v28 }
  0xb7   : > { %v284_v33 = vmul.f32 %v2001_v31, %v2176_v29 }
  0xb9   : > { %v285_v34 = vpack.c.bf16 %v282_v32, %v284_v33  ;;  %v1895_v32 = vld [vmem:[%s2449_s2 + $0xa0] sm:$0xff] }
  0xba   : > { %595 = vmatpush.bf16.msra.mxu3 %v1895_v32 }
  0xbb   : > { %v287_v36 = vunpack.c.l.bf16 %v285_v34 }
  0xbd   : > { %v288_v37 = vmul.f32 %v287_v36, %v286_v35  ;;  %v1894_v35 = vld [vmem:[%s2449_s2 + $0x98] sm:$0xff] }
  0xbe   : > { %596 = vmatpush.bf16.msra.mxu3 %v1894_v35 }
  0xbf   : > { %v289_v38 = vpack.c.bf16 %v288_v37, %v288_v37 }
  0xc1   : > { %363 = vmatmul.bf16.vlgmr.msra.gmra.mxu1 %v289_v38  ;;  %v1893_v38 = vld [vmem:[%s2449_s2 + $0x90] sm:$0xff] }
  0xc2   : > { %597 = vmatpush.bf16.msra.mxu3 %v1893_v38 }
  0xc6   : > { %598 = vmatpush.bf16.msra.mxu3 %v1892_v39 }
  0xca   : > { %599 = vmatpush.bf16.msra.mxu3 %v1891_v44 }
 0x13e   : > { %v364_v46 = vpop.f32.mrf.mxu1 }
 0x13f   : > { %v365_v47 = vadd.f32 %v364_v46, %v306_v43 }
 0x141   : > { %v368_v48 = vpack.c.bf16 %v365_v47, %v365_v47 }
 0x143   : > { %v369_v50 = vxor.u32 2147516416, %v368_v48  ;;  %v384_v3 = vunpack.c.l.bf16 %v368_v48 }
 0x145   : > { %v370_v51 = vunpack.c.l.bf16 %v369_v50 }
 0x146   : > { %v366_v53 = vpop.f32.mrf.mxu1 }
 0x147   : > { %v371_v54 = vmul.f32 1.442695, %v370_v51 }
 0x149   : > { %2002 = vpow2.f32 %v371_v54 }
 0x14f   : > { %v2003_v55 = vpop.eup %2002 }
 0x150   : > { %v373_v56 = vpack.c.bf16 %v2003_v55, %v2003_v55 }
 0x152   : > { %v374_v57 = vunpack.c.l.bf16 %v373_v56 }
 0x154   : > { %v375_v58 = vadd.f32 1.0, %v374_v57 }
 0x156   : > { %v376_v59 = vpack.c.bf16 %v375_v58, %v375_v58 }
 0x158   : > { %v377_v60 = vunpack.c.h.bf16 %v376_v59  ;;  %v378_v61 = vunpack.c.l.bf16 %v376_v59 }
 0x15a   : > { %2004 = vrcp.f32 %v377_v60 }
 0x15b   : > { %2006 = vrcp.f32 %v378_v61 }
 0x160   : > { %v2005_v62 = vpop.eup %2004 }
 0x161   : > { %v2007_v63 = vpop.eup %2006  ;;  %v380_v0 = vmul.f32 %v2005_v62, %v2174_v28 }
 0x162   : > { %v382_v1 = vmul.f32 %v2007_v63, %v2176_v29 }
 0x164   : > { %v383_v2 = vpack.c.bf16 %v380_v0, %v382_v1 }
 0x166   : > { %v385_v4 = vunpack.c.l.bf16 %v383_v2 }
 0x168   : > { %v386_v5 = vmul.f32 %v385_v4, %v384_v3 }
 0x16a   : > { %v387_v6 = vpack.c.bf16 %v386_v5, %v386_v5  ;;  %v1938_v5 = vld [vmem:[%s2449_s2 + $0x1f8] sm:$0xff] }
 0x16b   : > { %1039 = vmatpush.bf16.msrb.mxu3 %v1938_v5 }
 0x16c   : > { %462 = vmatmul.bf16.vlgmr.msra.gmra.mxu2 %v387_v6  ;;  %v1937_v6 = vld [vmem:[%s2449_s2 + $0x1f0] sm:$0xff] }
 0x16f   : > { %1040 = vmatpush.bf16.msrb.mxu3 %v1937_v6 }
 0x173   : > { %1041 = vmatpush.bf16.msrb.mxu3 %v1936_v8 }
 0x177   : > { %1042 = vmatpush.bf16.msrb.mxu3 %v1935_v9 }
 0x17b   : > { %1043 = vmatpush.bf16.msrb.mxu3 %v1934_v10 }
 0x17f   : > { %1044 = vmatpush.bf16.msrb.mxu3 %v1933_v11 }
 0x183   : > { %1045 = vmatpush.bf16.msrb.mxu3 %v1932_v14 }
 0x1ef   : > { %v463_v16 = vpop.f32.mrf.mxu2 }
 0x1f0   : > { %v464_v17 = vadd.f32 %v463_v16, %v405_v12  ;;  %v840_v12 = vperm.slane %v2159_v7, 6 }
 0x1f2   : > { %v467_v18 = vpack.c.bf16 %v464_v17, %v464_v17  ;;  %v1931_v17 = vld [vmem:[%s2449_s2 + $0x1c0] sm:$0xff] }
 0x1f3   : > { %1046 = vmatpush.bf16.msrb.mxu3 %v1931_v17 }
 0x1f4   : > { %v468_v20 = vxor.u32 2147516416, %v467_v18  ;;  %v483_v46 = vunpack.c.l.bf16 %v467_v18 }
 0x1f6   : > { %v469_v21 = vunpack.c.l.bf16 %v468_v20 }
 0x1f7   : > { %v465_v23 = vpop.f32.mrf.mxu2 }
 0x1f8   : > { %v470_v24 = vmul.f32 1.442695, %v469_v21 }
 0x1fa   : > { %2008 = vpow2.f32 %v470_v24  ;;  %v1906_v24 = vld [vmem:[%s2449_s2 + $0xf8] sm:$0xff] }
 0x1fb   : > { %691 = vmatpush.bf16.msrb.mxu0 %v1906_v24  ;;  %v1912_v24 = vld [vmem:[%s2449_s2 + $0x128] sm:$0xff] }
 0x200   : > { %v2009_v26 = vpop.eup %2008 }
 0x201   : > { %v472_v30 = vpack.c.bf16 %v2009_v26, %v2009_v26 }
 0x203   : > { %v473_v31 = vunpack.c.l.bf16 %v472_v30  ;;  %v1905_v30 = vld [vmem:[%s2449_s2 + $0xf0] sm:$0xff] }
 0x204   : > { %692 = vmatpush.bf16.msrb.mxu0 %v1905_v30  ;;  %v642_v30 = vperm.slane %v2159_v7, 4 }
 0x205   : > { %v474_v33 = vadd.f32 1.0, %v473_v31 }
 0x207   : > { %v475_v34 = vpack.c.bf16 %v474_v33, %v474_v33  ;;  %v1904_v33 = vld [vmem:[%s2449_s2 + $0xe8] sm:$0xff] }
 0x208   : > { %693 = vmatpush.bf16.msrb.mxu0 %v1904_v33  ;;  %v1909_v33 = vld [vmem:[%s2449_s2 + $0x110] sm:$0xff] }
 0x209   : > { %v476_v36 = vunpack.c.h.bf16 %v475_v34  ;;  %v477_v37 = vunpack.c.l.bf16 %v475_v34 }
 0x20b   : > { %2010 = vrcp.f32 %v476_v36 }
 0x20c   : > { %2012 = vrcp.f32 %v477_v37 }
 0x211   : > { %v2011_v40 = vpop.eup %2010 }
 0x212   : > { %v2013_v41 = vpop.eup %2012  ;;  %v479_v42 = vmul.f32 %v2011_v40, %v2174_v28  ;;  %v1903_v40 = vld [vmem:[%s2449_s2 + $0xe0] sm:$0xff] }
 0x213   : > { %v481_v43 = vmul.f32 %v2013_v41, %v2176_v29  ;;  %694 = vmatpush.bf16.msrb.mxu0 %v1903_v40 }
 0x215   : > { %v482_v45 = vpack.c.bf16 %v479_v42, %v481_v43  ;;  %v530_v43 = vperm.slane %v2159_v7, 3 }
 0x217   : > { %v484_v47 = vunpack.c.l.bf16 %v482_v45 }
 0x219   : > { %v485_v48 = vmul.f32 %v484_v47, %v483_v46  ;;  %v1902_v46 = vld [vmem:[%s2449_s2 + $0xd8] sm:$0xff] }
 0x21a   : > { %695 = vmatpush.bf16.msrb.mxu0 %v1902_v46  ;;  %v1954_v46 = vld [vmem:[%s2449_s2 + $0x278] sm:$0xff] }
 0x21b   : > { %v486_v49 = vpack.c.bf16 %v485_v48, %v485_v48  ;;  %v1901_v48 = vld [vmem:[%s2449_s2 + $0xd0] sm:$0xff] }
 0x21d   : > { %v488_v50 = vrot.slane %v486_v49, 2  ;;  %897 = vmatmul.bf16.vlgmr.msrb.gmra.mxu2 %v486_v49 }
 0x21e   : > { %696 = vmatpush.bf16.msrb.mxu0 %v1901_v48 }
 0x21f   : > { %v492_v51 = vsel %vm489_vm1, %v486_v49, %v488_v50 }
 0x220   : > { %v495_v52 = vrot.slane %v492_v51, 2  ;;  %v496_v53 = vrot.slane %v492_v51, 3  ;;  %v494_v54 = vrot.slane %v492_v51, 1 }
 0x222   : > { %v499_v55 = vsel %vm497_vm2, %v492_v51, %v494_v54  ;;  %v503_v56 = vsel %vm500_vm3, %v495_v52, %v496_v53  ;;  %v506_v58 = vsel %vm505_vm4, %v492_v51, %v494_v54  ;;  %v508_v59 = vsel %vm507_vm5, %v495_v52, %v496_v53 }
 0x223   : > { %v504_v57 = vsel %vm489_vm1, %v499_v55, %v503_v56  ;;  %v510_v60 = vsel %vm509_vm6, %v506_v58, %v508_v59  ;;  %v1900_v55 = vld [vmem:[%s2449_s2 + $0xc8] sm:$0xff] }
 0x224   : > { %531 = vst [vmem:[#allocation1] ss:$9 sm:$0xff] %v504_v57  ;;  %v512_v61 = vrot.slane %v510_v60, 1  ;;  %697 = vmatpush.bf16.msrb.mxu0 %v1900_v55 }
 0x22b   : > { %v532_v62 = vld [vmem:[#allocation1] sm:$0xf] }
 0x22c   : > { %535 = vst [vmem:[#allocation1] ss:$9 sm:$0xff] %v512_v61  ;;  %v538_v1 = vunpack.c.l.b16 %v532_v62  ;;  %v1899_v61 = vld [vmem:[%s2449_s2 + $0xc0] sm:$0xff] }
 0x22d   : > { %698 = vmatpush.bf16.msrb.mxu0 %v1899_v61 }
 0x233   : > { %v536_v63 = vld [vmem:[#allocation1] sm:$0xf] }
 0x234   : > { %v539_v0 = vunpack.c.l.b16 %v536_v63 }
 0x236   : > { %v540_v2 = vrot.slane %v539_v0, 7 }
 0x238   : > { %v541_v3 = vsel %vm505_vm4, %v540_v2, %v538_v1 }
 0x239   : > { %v542_v4 = vpack.c.b16 %v541_v3, %v541_v3 }
 0x23b   : > { %600 = vmatmul.bf16.vlgmr.msra.gmra.mxu3 %v542_v4 }
 0x2a0   : > { %v898_v13 = vpop.f32.mrf.mxu2 }
 0x2a1   : > { %v899_v15 = vadd.f32 %v898_v13, %v840_v12 }
 0x2a3   : > { %v904_v16 = vmax.f32 %v899_v15, 0.0 }
 0x2a5   : > { %v905_v18 = vpack.c.bf16 %v904_v16, %v904_v16 }
 0x2a7   : > { %v907_v19 = vrot.slane %v905_v18, 2 }
 0x2a8   : > { %v900_v20 = vpop.f32.mrf.mxu2 }
 0x2a9   : > { %v910_v21 = vsel %vm489_vm1, %v905_v18, %v907_v19  ;;  %v912_v22 = vsel %vm911_vm7, %v905_v18, %v907_v19  ;;  %v1914_v20 = vld [vmem:[%s2449_s2 + $0x138] sm:$0xff] }
 0x2aa   : > { %v914_v23 = vrot.slane %v912_v22, 2  ;;  %v917_v25 = vunpack.c.l.bf16 %v910_v21  ;;  %v1930_v21 = vld [vmem:[%s2449_s2 + $0x1b8] sm:$0xff]  ;;  %790 = vmatpush.bf16.msrb.mxu1 %v1914_v20  ;;  %v1913_v22 = vld [vmem:[%s2449_s2 + $0x130] sm:$0xff] }
 0x2ab   : > { %1100 = vmatpush.bf16.msra.mxu0 %v1930_v21 }
 0x2ac   : > { %v918_v26 = vunpack.c.l.bf16 %v914_v23  ;;  %v1929_v23 = vld [vmem:[%s2449_s2 + $0x1b0] sm:$0xff] }
 0x2ae   : > { %v919_v27 = vmax.f32 %v917_v25, %v918_v26  ;;  %791 = vmatpush.bf16.msrb.mxu1 %v1913_v22  ;;  %v1928_v25 = vld [vmem:[%s2449_s2 + $0x1a8] sm:$0xff]  ;;  %v1911_v26 = vld [vmem:[%s2449_s2 + $0x120] sm:$0xff] }
 0x2af   : > { %1101 = vmatpush.bf16.msra.mxu0 %v1929_v23 }
 0x2b0   : > { %v920_v31 = vpack.c.bf16 %v919_v27, %v919_v27  ;;  %v1927_v27 = vld [vmem:[%s2449_s2 + $0x1a0] sm:$0xff] }
 0x2b2   : > { %v922_v32 = vrot.slane %v920_v31, 3  ;;  %792 = vmatpush.bf16.msrb.mxu1 %v1912_v24  ;;  %v1940_v24 = vld [vmem:[%s2449_s2 + $0x208] sm:$0xff] }
 0x2b3   : > { %1102 = vmatpush.bf16.msra.mxu0 %v1928_v25 }
 0x2b4   : > { %v926_v34 = vsel %vm505_vm4, %v920_v31, %v922_v32  ;;  %v925_v35 = vsel %vm497_vm2, %v920_v31, %v922_v32  ;;  %v1910_v31 = vld [vmem:[%s2449_s2 + $0x118] sm:$0xff] }
 0x2b5   : > { %v928_v36 = vrot.slane %v926_v34, 1  ;;  %v931_v37 = vunpack.c.l.bf16 %v925_v35  ;;  %v1926_v32 = vld [vmem:[%s2449_s2 + $0x198] sm:$0xff]  ;;  %v1925_v34 = vld [vmem:[%s2449_s2 + $0x190] sm:$0xff] }
 0x2b6   : > { %793 = vmatpush.bf16.msrb.mxu1 %v1911_v26 }
 0x2b7   : > { %v932_v38 = vunpack.c.l.bf16 %v928_v36  ;;  %v1674_v39 = vrot.slane %v931_v37, 9  ;;  %1103 = vmatpush.bf16.msra.mxu0 %v1927_v27 }
 0x2b9   : > { %v1675_v41 = vrot.slane %v932_v38, 9  ;;  %v941_v42 = vmax.f32 %v931_v37, %v1674_v39  ;;  %v1924_v39 = vld [vmem:[%s2449_s2 + $0x188] sm:$0xff] }
 0x2ba   : > { %794 = vmatpush.bf16.msrb.mxu1 %v1910_v31 }
 0x2bb   : > { %v942_v44 = vmax.f32 %v932_v38, %v1675_v41  ;;  %v943_v45 = vpack.c.bf16 %v941_v42, %v941_v42  ;;  %1104 = vmatpush.bf16.msra.mxu0 %v1926_v32  ;;  %v1908_v38 = vld [vmem:[%s2449_s2 + $0x108] sm:$0xff]  ;;  %v1907_v42 = vld [vmem:[%s2449_s2 + $0x100] sm:$0xff] }
 0x2bd   : > { %v944_v47 = vpack.c.bf16 %v942_v44, %v942_v44  ;;  %v981_v51 = vunpack.c.l.b16 %v943_v45 }
 0x2be   : > { %v601_v49 = vpop.f32.mrf.mxu3  ;;  %795 = vmatpush.bf16.msrb.mxu1 %v1909_v33 }
 0x2bf   : > { %v602_v50 = vadd.f32 %v601_v49, %v530_v43  ;;  %v982_v52 = vunpack.c.l.b16 %v944_v47  ;;  %v1708_v57 = vunpack.i.l.s16 %v981_v51  ;;  %1105 = vmatpush.bf16.msra.mxu0 %v1925_v34  ;;  %v1923_v43 = vld [vmem:[%s2449_s2 + $0x180] sm:$0xff]  ;;  %v1953_v47 = vld [vmem:[%s2449_s2 + $0x270] sm:$0xff]  ;;  %v1952_v51 = vld [vmem:[%s2449_s2 + $0x268] sm:$0xff] }
 0x2c1   : > { %v605_v53 = vpack.c.bf16 %v602_v50, %v602_v50  ;;  %v1709_v54 = vunpack.i.l.s16 %v982_v52 }
 0x2c2   : > { %796 = vmatpush.bf16.msrb.mxu1 %v1908_v38 }
 0x2c3   : > { %v606_v56 = vxor.u32 2147516416, %v605_v53  ;;  %v987_v58 = vrot.slane %v1709_v54, 7  ;;  %v621_v14 = vunpack.c.l.bf16 %v605_v53  ;;  %1106 = vmatpush.bf16.msra.mxu0 %v1924_v39  ;;  %v1951_v54 = vld [vmem:[%s2449_s2 + $0x260] sm:$0xff] }
 0x2c5   : > { %v607_v59 = vunpack.c.l.bf16 %v606_v56  ;;  %v988_v60 = vsel %vm505_vm4, %v987_v58, %v1708_v57  ;;  %v1950_v57 = vld [vmem:[%s2449_s2 + $0x258] sm:$0xff]  ;;  %v1949_v58 = vld [vmem:[%s2449_s2 + $0x250] sm:$0xff] }
 0x2c6   : > { %v603_v62 = vpop.f32.mrf.mxu3  ;;  %v989_v63 = vpack.c.b16 %v988_v60, %v988_v60  ;;  %797 = vmatpush.bf16.msrb.mxu1 %v1907_v42 }
 0x2c7   : > { %v608_v0 = vmul.f32 1.442695, %v607_v59  ;;  %1107 = vmatpush.bf16.msra.mxu0 %v1923_v43 }
 0x2c8   : > { %1047 = vmatmul.bf16.vlgmr.msrb.gmra.mxu3 %v989_v63 }
 0x2c9   : > { %2014 = vpow2.f32 %v608_v0 }
 0x2ca   : > { %1201 = vmatpush.bf16.msra.mxu1 %v1954_v46 }
 0x2ce   : > { %1202 = vmatpush.bf16.msra.mxu1 %v1953_v47 }
 0x2cf   : > { %v2015_v1 = vpop.eup %2014 }
 0x2d0   : > { %v610_v2 = vpack.c.bf16 %v2015_v1, %v2015_v1 }
 0x2d2   : > { %v611_v3 = vunpack.c.l.bf16 %v610_v2  ;;  %1203 = vmatpush.bf16.msra.mxu1 %v1952_v51 }
 0x2d4   : > { %v612_v4 = vadd.f32 1.0, %v611_v3 }
 0x2d6   : > { %v613_v5 = vpack.c.bf16 %v612_v4, %v612_v4  ;;  %1204 = vmatpush.bf16.msra.mxu1 %v1951_v54  ;;  %v1948_v4 = vld [vmem:[%s2449_s2 + $0x248] sm:$0xff] }
 0x2d8   : > { %v614_v6 = vunpack.c.h.bf16 %v613_v5  ;;  %v615_v8 = vunpack.c.l.bf16 %v613_v5  ;;  %v1947_v5 = vld [vmem:[%s2449_s2 + $0x240] sm:$0xff] }
 0x2da   : > { %2016 = vrcp.f32 %v614_v6  ;;  %1205 = vmatpush.bf16.msra.mxu1 %v1950_v57  ;;  %v1946_v6 = vld [vmem:[%s2449_s2 + $0x238] sm:$0xff] }
 0x2db   : > { %2018 = vrcp.f32 %v615_v8  ;;  %1262 = vmatpush.bf16.msra.mxu2 %v1946_v6  ;;  %v1945_v8 = vld [vmem:[%s2449_s2 + $0x230] sm:$0xff] }
 0x2de   : > { %1206 = vmatpush.bf16.msra.mxu1 %v1949_v58 }
 0x2df   : > { %1263 = vmatpush.bf16.msra.mxu2 %v1945_v8 }
 0x2e0   : > { %v2017_v9 = vpop.eup %2016 }
 0x2e1   : > { %v2019_v10 = vpop.eup %2018  ;;  %v617_v11 = vmul.f32 %v2017_v9, %v2174_v28  ;;  %v1944_v9 = vld [vmem:[%s2449_s2 + $0x228] sm:$0xff] }
 0x2e2   : > { %v619_v12 = vmul.f32 %v2019_v10, %v2176_v29  ;;  %1207 = vmatpush.bf16.msra.mxu1 %v1948_v4  ;;  %v1943_v10 = vld [vmem:[%s2449_s2 + $0x220] sm:$0xff] }
 0x2e3   : > { %1264 = vmatpush.bf16.msra.mxu2 %v1944_v9 }
 0x2e4   : > { %v620_v13 = vpack.c.bf16 %v617_v11, %v619_v12  ;;  %v741_v11 = vperm.slane %v2159_v7, 5  ;;  %v1942_v12 = vld [vmem:[%s2449_s2 + $0x218] sm:$0xff] }
 0x2e6   : > { %v622_v15 = vunpack.c.l.bf16 %v620_v13  ;;  %1208 = vmatpush.bf16.msra.mxu1 %v1947_v5  ;;  %v1113_v13 = vperm.slane %v2159_v7, 7 }
 0x2e7   : > { %1265 = vmatpush.bf16.msra.mxu2 %v1943_v10 }
 0x2e8   : > { %v623_v16 = vmul.f32 %v622_v15, %v621_v14 }
 0x2ea   : > { %v624_v17 = vpack.c.bf16 %v623_v16, %v623_v16 }
 0x2eb   : > { %1266 = vmatpush.bf16.msra.mxu2 %v1942_v12 }
 0x2ec   : > { %699 = vmatmul.bf16.vlgmr.msrb.gmra.mxu0 %v624_v17 }
 0x34b   : > { %v2319_v18 = vpop.f32.mrf.mxu3 }
 0x353   : > { %v1050_v19 = vpop.f32.mrf.mxu3 }
 0x354   : > { %v1941_v19 = vld [vmem:[%s2449_s2 + $0x210] sm:$0xff] }
 0x355   : > { %1267 = vmatpush.bf16.msra.mxu2 %v1941_v19 }
 0x359   : > { %1268 = vmatpush.bf16.msra.mxu2 %v1940_v24 }
 0x369   : > { %v700_v35 = vpop.f32.mrf.mxu0 }
 0x36a   : > { %v701_v36 = vadd.f32 %v700_v35, %v642_v30 }
 0x36c   : > { %v704_v37 = vpack.c.bf16 %v701_v36, %v701_v36 }
 0x36e   : > { %v705_v40 = vxor.u32 2147516416, %v704_v37  ;;  %v720_v0 = vunpack.c.l.bf16 %v704_v37 }
 0x370   : > { %v706_v41 = vunpack.c.l.bf16 %v705_v40 }
 0x371   : > { %v702_v44 = vpop.f32.mrf.mxu0 }
 0x372   : > { %v707_v45 = vmul.f32 1.442695, %v706_v41 }
 0x374   : > { %2020 = vpow2.f32 %v707_v45 }
 0x37a   : > { %v2021_v48 = vpop.eup %2020 }
 0x37b   : > { %v709_v49 = vpack.c.bf16 %v2021_v48, %v2021_v48 }
 0x37d   : > { %v710_v50 = vunpack.c.l.bf16 %v709_v49  ;;  %v237_v49 = vld [vmem:[%s2450_s3 + $0x8] sm:$0xff] }
 0x37f   : > { %v711_v52 = vadd.f32 1.0, %v710_v50  ;;  %v1275_v50 = vperm.slane %v237_v49, 0 }
 0x381   : > { %v712_v53 = vpack.c.bf16 %v711_v52, %v711_v52 }
 0x383   : > { %v713_v55 = vunpack.c.h.bf16 %v712_v53  ;;  %v714_v56 = vunpack.c.l.bf16 %v712_v53 }
 0x385   : > { %2022 = vrcp.f32 %v713_v55 }
 0x386   : > { %2024 = vrcp.f32 %v714_v56 }
 0x38b   : > { %v2023_v59 = vpop.eup %2022 }
 0x38c   : > { %v2025_v60 = vpop.eup %2024  ;;  %v716_v61 = vmul.f32 %v2023_v59, %v2174_v28 }
 0x38d   : > { %v718_v62 = vmul.f32 %v2025_v60, %v2176_v29 }
 0x38f   : > { %v719_v63 = vpack.c.bf16 %v716_v61, %v718_v62 }
 0x391   : > { %v721_v1 = vunpack.c.l.bf16 %v719_v63 }
 0x393   : > { %v722_v2 = vmul.f32 %v721_v1, %v720_v0 }
 0x395   : > { %v723_v3 = vpack.c.bf16 %v722_v2, %v722_v2 }
 0x397   : > { %798 = vmatmul.bf16.vlgmr.msrb.gmra.mxu1 %v723_v3  ;;  %1108 = vmatmul.bf16.vlgmr.msra.gmra.mxu0 %v723_v3 }
 0x414   : > { %v799_v14 = vpop.f32.mrf.mxu1  ;;  %v1109_v15 = vpop.f32.mrf.mxu0 }
 0x415   : > { %v800_v16 = vadd.f32 %v799_v14, %v741_v11  ;;  %v1110_v17 = vadd.f32 %v1109_v15, %v2319_v18  ;;  %v1939_v18 = vld [vmem:[%s2449_s2 + $0x200] sm:$0xff] }
 0x416   : > { %1269 = vmatpush.bf16.msra.mxu2 %v1939_v18 }
 0x417   : > { %v803_v20 = vpack.c.bf16 %v800_v16, %v800_v16  ;;  %v1114_v21 = vadd.f32 %v1113_v13, %v1110_v17 }
 0x419   : > { %v804_v22 = vxor.u32 2147516416, %v803_v20  ;;  %v1117_v23 = vmax.f32 %v1114_v21, 0.0  ;;  %v819_v43 = vunpack.c.l.bf16 %v803_v20 }
 0x41b   : > { %v805_v7 = vunpack.c.l.bf16 %v804_v22  ;;  %v1118_v25 = vpack.c.bf16 %v1117_v23, %v1117_v23 }
 0x41c   : > { %v801_v26 = vpop.f32.mrf.mxu1  ;;  %v1111_v27 = vpop.f32.mrf.mxu0 }
 0x41d   : > { %v806_v30 = vmul.f32 1.442695, %v805_v7  ;;  %1209 = vmatmul.bf16.vlgmr.msra.gmra.mxu1 %v1118_v25 }
 0x41f   : > { %2026 = vpow2.f32 %v806_v30 }
 0x425   : > { %v2027_v31 = vpop.eup %2026 }
 0x426   : > { %v808_v32 = vpack.c.bf16 %v2027_v31, %v2027_v31 }
 0x428   : > { %v809_v33 = vunpack.c.l.bf16 %v808_v32 }
 0x42a   : > { %v810_v34 = vadd.f32 1.0, %v809_v33 }
 0x42c   : > { %v811_v35 = vpack.c.bf16 %v810_v34, %v810_v34 }
 0x42e   : > { %v812_v36 = vunpack.c.h.bf16 %v811_v35  ;;  %v813_v37 = vunpack.c.l.bf16 %v811_v35 }
 0x430   : > { %2028 = vrcp.f32 %v812_v36 }
 0x431   : > { %2030 = vrcp.f32 %v813_v37 }
 0x436   : > { %v2029_v38 = vpop.eup %2028 }
 0x437   : > { %v2031_v39 = vpop.eup %2030  ;;  %v815_v40 = vmul.f32 %v2029_v38, %v2174_v28 }
 0x438   : > { %v817_v41 = vmul.f32 %v2031_v39, %v2176_v29 }
 0x43a   : > { %v818_v42 = vpack.c.bf16 %v815_v40, %v817_v41 }
 0x43c   : > { %v820_v44 = vunpack.c.l.bf16 %v818_v42 }
 0x43e   : > { %v821_v45 = vmul.f32 %v820_v44, %v819_v43 }
 0x440   : > { %v822_v46 = vpack.c.bf16 %v821_v45, %v821_v45 }
 0x442   : > { %1270 = vmatmul.bf16.vlgmr.msra.gmra.mxu2 %v822_v46 }
 0x49a   : > { %v1210_v47 = vpop.f32.mrf.mxu1 }
 0x4a2   : > { %v1212_v48 = vpop.f32.mrf.mxu1 }
 0x4c5   : > { %v1271_v51 = vpop.f32.mrf.mxu2 }
 0x4c6   : > { %v1272_v52 = vadd.f32 %v1271_v51, %v1210_v47 }
 0x4c8   : > { %v1276_v53 = vadd.f32 %v1275_v50, %v1272_v52 }
 0x4ca   : > { %v1870_v28 = vmul.f32 -1.442695, %v1276_v53 }
 0x4cc   : > { %2032 = vpow2.f32 %v1870_v28 }
 0x4cd   : > { %v1273_v29 = vpop.f32.mrf.mxu2 }
 0x4d2   : > { %v2033_v54 = vpop.eup %2032 }
 0x4d3   : > { %v1280_v55 = vadd.f32 1.0, %v2033_v54 }
 0x4d5   : > { %2034 = vrcp.f32 %v1280_v55  ;;  %v1292_v59 = vand.u32 2147483648, %v1280_v55  ;;  %v1290_v61 = vand.u32 2147483647, %v1280_v55  ;;  %vm1286_vm9 = vweird.f32 %v1280_v55 }
 0x4d7   : > { %v1293_v63 = vor.u32 1.1754944e-38, %v1292_v59  ;;  %vm1291_vm11 = vcmp.eq.f32.partialorder %v1290_v61, 8.507059e+37 }
 0x4db   : > { %v2035_v56 = vpop.eup %2034 }
 0x4dc   : > { %v1282_v57 = vmul.f32 %v2035_v56, %v1280_v55  ;;  %vm1287_vm8 = vweird.f32 %v2035_v56 }
 0x4dd   : > { %vm1288_vm10 = vmor %vm1286_vm9, %vm1287_vm8 }
 0x4de   : > { %v1283_v58 = vsub.f32 1.0, %v1282_v57 }
 0x4e0   : > { %v1284_v60 = vmul.f32 %v2035_v56, %v1283_v58 }
 0x4e2   : > { %v1285_v62 = vadd.f32 %v2035_v56, %v1284_v60 }
 0x4e4   : > { %v1289_v0 = vsel %vm1288_vm10, %v2035_v56, %v1285_v62 }
 0x4e5   : > { %v1294_v1 = vsel %vm1291_vm11, %v1293_v63, %v1289_v0 }
 0x4e6   : > { %v1296_v2 = vmul.f32 %v1294_v1, %v1276_v53 }
 0x4e8   : > { %1297 = vst [vmem:[%s228_s13] sm:$0x3] %v1296_v2 }
 0x4e9 PF: > { %s14_s19 = sadd.s32 1, %s2074_s19   ;;  %s2452_s15 = smov %s2066_s17 }
 0x4ea   : > { %p11_p7 = scmp.ge.s32.totalorder %s14_s19, 6   ;;  %s2453_s16 = smov %s2070_s18 }
 0x4eb   : > { %s2454_s17 = smov %s2457_s20  ;;  %s2455_s18 = smov %s2461_s21 }
 0x4ec   :  { %13 = sbr.rel (!%p11_p7) target bundleno = 3 (0x3), region = 75 }

</bundles_post_ra>
